<compile_context>
chip_gen: v6e
topology: v6e:2x2x1
jax: 0.10.0
libtpu: 0.0.40
codegen_flags: <defaults>
</compile_context>

<pallas_src>
import jax
import jax.numpy as jnp
from jax.experimental import pallas as pl
from jax.experimental.pallas import tpu as pltpu

HIDDEN = 64        # PyTorch hidden_size
HIDDEN_PAD = 128   # padded hidden width (full lane tile / MXU edge)


def critic_kernel(x_ref, w1_ref, b1_ref, w2_ref, b2_ref, w3_ref, b3_ref, o_ref):
    """Fused 3-layer MLP on one batch tile; output written as a lane-dense row."""
    x = x_ref[...]                                       # (TILE_B, d_in) bf16

    # Layer 1: bf16 MXU matmul with f32 accumulation; bias/ReLU in f32.
    h1 = jnp.dot(x, w1_ref[...],
                 preferred_element_type=jnp.float32) + b1_ref[...]
    h1 = jnp.maximum(h1, 0.0)                            # ReLU (Dropout = identity)

    # Layer 2.
    h2 = jnp.dot(h1.astype(jnp.bfloat16), w2_ref[...],
                 preferred_element_type=jnp.float32) + b2_ref[...]
    h2 = jnp.maximum(h2, 0.0)                            # ReLU (Dropout = identity)

    # Layer 3: contract the hidden axis of the (1,128) W3-row against
    # (TILE_B,128) h2 (q @ k^T style) -> directly lane-dense (1, TILE_B).
    out = jax.lax.dot_general(
        w3_ref[...], h2.astype(jnp.bfloat16),
        dimension_numbers=(((1,), (1,)), ((), ())),
        preferred_element_type=jnp.float32) + b3_ref[0]
    o_ref[...] = out.astype(o_ref.dtype)                 # unmasked full-lane stores


def _round_up(x, m):
    return ((x + m - 1) // m) * m


def prepare_critic_params(params, hidden=HIDDEN, hidden_pad=HIDDEN_PAD):
    """One-time repack: pad hidden 64->128, cast matmul weights to bf16."""
    w1, b1, w2, b2, w3, b3 = [p.astype(jnp.float32) for p in params]
    ph = hidden_pad - hidden
    pad_cols = lambda a: jnp.pad(a, ((0, 0), (0, ph)))
    w1p = pad_cols(w1).astype(jnp.bfloat16)                        # (d_in, 128)
    b1p = pad_cols(b1)                                             # (1, 128) f32
    w2p = jnp.pad(w2, ((0, ph), (0, ph))).astype(jnp.bfloat16)     # (128, 128)
    b2p = pad_cols(b2)                                             # (1, 128) f32
    w3row = pad_cols(w3.T).astype(jnp.bfloat16)                    # (1, 128)
    b3s = b3.reshape((1,))                                         # (1,) SMEM scalar
    return (w1p, b1p, w2p, b2p, w3row, b3s)


def _pick_tile_b(batch, tile_cap):
    """Multiple of 256, capped for VMEM, >=2 tiles when batch is big enough."""
    tile_cap = max(256, min(int(tile_cap), 8192))   # 8192 f32-safe on v7x 64 MiB/TC
    b_pad256 = _round_up(batch, 256)
    if b_pad256 >= 512:
        # ensure at least two grid tiles so both v7x TensorCores get work
        two_tile = _round_up(-(-b_pad256 // 2), 256)
        return min(tile_cap, two_tile)
    return min(tile_cap, b_pad256)


def critic_forward(ob, ac, kernel_params, *, tile_b=8192):
    """Run the fused critic MLP Pallas kernel over a batch-tiled grid."""
    w1, b1, w2, b2, w3row, b3 = kernel_params
    # Concat once in the wrapper (matches torch.cat), stream as bf16.
    x = jnp.concatenate([ob.astype(jnp.float32), ac.astype(jnp.float32)],
                        axis=-1).astype(jnp.bfloat16)
    B, d_in = x.shape

    tile_b = _pick_tile_b(B, tile_b)
    b_pad = _round_up(B, tile_b)
    if b_pad != B:
        x = jnp.pad(x, ((0, b_pad - B), (0, 0)))
    num_tiles = b_pad // tile_b

    flops = 2 * b_pad * (d_in * HIDDEN_PAD + HIDDEN_PAD * HIDDEN_PAD + HIDDEN_PAD)
    param_bytes = 2 * (d_in * HIDDEN_PAD + HIDDEN_PAD * HIDDEN_PAD + HIDDEN_PAD) \
        + 4 * (2 * HIDDEN_PAD + 1)
    bytes_accessed = 2 * b_pad * d_in + 4 * b_pad + param_bytes

    out_row = pl.pallas_call(
        critic_kernel,
        out_shape=jax.ShapeDtypeStruct((1, b_pad), jnp.float32),
        grid=(num_tiles,),
        in_specs=[
            pl.BlockSpec((tile_b, d_in), lambda i: (i, 0)),            # x (streamed)
            pl.BlockSpec((d_in, HIDDEN_PAD), lambda i: (0, 0)),        # W1 (resident)
            pl.BlockSpec((1, HIDDEN_PAD), lambda i: (0, 0)),           # b1
            pl.BlockSpec((HIDDEN_PAD, HIDDEN_PAD), lambda i: (0, 0)),  # W2 (resident)
            pl.BlockSpec((1, HIDDEN_PAD), lambda i: (0, 0)),           # b2
            pl.BlockSpec((1, HIDDEN_PAD), lambda i: (0, 0)),           # W3 row
            pl.BlockSpec(memory_space=pltpu.MemorySpace.SMEM),         # b3 scalar
        ],
        out_specs=pl.BlockSpec((1, tile_b), lambda i: (0, i)),
        compiler_params=pltpu.CompilerParams(
            dimension_semantics=("parallel",),      # shard batch tiles across TCs
            vmem_limit_bytes=48 * 1024 * 1024,      # <= v7x 64 MiB/TC ceiling
        ),
        cost_estimate=pl.CostEstimate(
            flops=flops, transcendentals=0, bytes_accessed=bytes_accessed),
    )(x, w1, b1, w2, b2, w3row, b3)

    # (1, B_pad) lane-dense slab -> (B, 1) column expected by the Critic API.
    return out_row[0, :B][:, None]


def init_critic_params(key, ob_dim, ac_dim, hidden_size=HIDDEN):
    """Deterministic init mimicking nn.Linear (uniform(-1/sqrt(fan_in), ...))."""
    d_in = ob_dim + ac_dim
    dims = [(d_in, hidden_size), (hidden_size, hidden_size), (hidden_size, 1)]
    params = []
    for (fan_in, fan_out) in dims:
        key, kw, kb = jax.random.split(key, 3)
        bound = 1.0 / jnp.sqrt(jnp.float32(fan_in))
        w = jax.random.uniform(kw, (fan_in, fan_out), jnp.float32, -bound, bound)
        b = jax.random.uniform(kb, (1, fan_out), jnp.float32, -bound, bound)
        params += [w, b]
    return tuple(params)


def critic_reference(ob, ac, params):
    """Pure-JAX f32 reference for correctness checking."""
    w1, b1, w2, b2, w3, b3 = params
    x = jnp.concatenate([ob, ac], axis=-1).astype(jnp.float32)
    h1 = jnp.maximum(x @ w1 + b1, 0.0)
    h2 = jnp.maximum(h1 @ w2 + b2, 0.0)
    return h2 @ w3 + b3


if __name__ == "__main__":
    key = jax.random.PRNGKey(0)
    k_ob, k_ac, k_p = jax.random.split(key, 3)

    B, ob_dim, ac_dim = 8, 12, 4
    ob = jax.random.normal(k_ob, (B, ob_dim), jnp.float32)
    ac = jax.random.normal(k_ac, (B, ac_dim), jnp.float32)
    params = init_critic_params(k_p, ob_dim, ac_dim, HIDDEN)
    kparams = prepare_critic_params(params)

    out = critic_forward(ob, ac, kparams)
    jax.block_until_ready(out)

    ref = critic_reference(ob, ac, params)
    assert out.shape == (B, 1), out.shape
    # bf16 matmul operands (f32 accumulation) -> ~1e-2 relative parity with f32 ref.
    assert jnp.allclose(out, ref, atol=2e-2, rtol=2e-2), (out, ref)

    print("KERNEL_OK")
</pallas_src>

<mosaic_0001>
module attributes {stable_mosaic.version = 11 : i64} {
  func.func @critic_kernel(%arg0: i32, %arg1: memref<256x16xbf16, #tpu.memory_space<vmem>>, %arg2: memref<16x128xbf16, #tpu.memory_space<vmem>>, %arg3: memref<1x128xf32, #tpu.memory_space<vmem>>, %arg4: memref<128x128xbf16, #tpu.memory_space<vmem>>, %arg5: memref<1x128xf32, #tpu.memory_space<vmem>>, %arg6: memref<1x128xbf16, #tpu.memory_space<vmem>>, %arg7: memref<1xf32, #tpu.memory_space<smem>>, %arg8: memref<1x256xf32, #tpu.memory_space<vmem>>) attributes {dimension_semantics = [#tpu.dimension_semantics<parallel>], iteration_bounds = array<i64: 1>, scalar_prefetch = 0 : i64, scratch_operands = 0 : i64, tpu.core_type = #tpu.core_type<tc>, window_params = [{transform_indices = @transform_0, window_bounds = array<i64: 256, 16>}, {pipeline_mode = #tpu.pipeline_mode<synchronous>, transform_indices = @transform_1, window_bounds = array<i64: 16, 128>}, {pipeline_mode = #tpu.pipeline_mode<synchronous>, transform_indices = @transform_2, window_bounds = array<i64: 1, 128>}, {pipeline_mode = #tpu.pipeline_mode<synchronous>, transform_indices = @transform_3, window_bounds = array<i64: 128, 128>}, {pipeline_mode = #tpu.pipeline_mode<synchronous>, transform_indices = @transform_4, window_bounds = array<i64: 1, 128>}, {pipeline_mode = #tpu.pipeline_mode<synchronous>, transform_indices = @transform_5, window_bounds = array<i64: 1, 128>}, {transform_indices = @transform_6, window_bounds = array<i64: 1>}, {transform_indices = @transform_7, window_bounds = array<i64: 1, 256>}]} {
    %c0 = arith.constant 0 : index
    %c0_0 = arith.constant 0 : index
    %0 = vector.load %arg1[%c0, %c0_0] : memref<256x16xbf16, #tpu.memory_space<vmem>>, vector<256x16xbf16>
    %c0_1 = arith.constant 0 : index
    %c0_2 = arith.constant 0 : index
    %1 = vector.load %arg2[%c0_1, %c0_2] : memref<16x128xbf16, #tpu.memory_space<vmem>>, vector<16x128xbf16>
    %cst = arith.constant dense<0.000000e+00> : vector<256x128xf32>
    %2 = tpu.matmul %0, %1, %cst {dimension_numbers = #tpu.dot_dimension_numbers<[1], [0], [0], [1], [0, 0, 1, 1], [], []>} : vector<256x16xbf16>, vector<16x128xbf16>, vector<256x128xf32> -> vector<256x128xf32>
    %c0_3 = arith.constant 0 : index
    %c0_4 = arith.constant 0 : index
    %3 = vector.load %arg3[%c0_3, %c0_4] : memref<1x128xf32, #tpu.memory_space<vmem>>, vector<1x128xf32>
    %4 = vector.broadcast %3 : vector<1x128xf32> to vector<256x128xf32>
    %5 = arith.addf %2, %4 : vector<256x128xf32>
    %cst_5 = arith.constant 0.000000e+00 : f32
    %6 = vector.broadcast %cst_5 : f32 to vector<256x128xf32>
    %7 = arith.maximumf %5, %6 : vector<256x128xf32>
    %8 = arith.truncf %7 : vector<256x128xf32> to vector<256x128xbf16>
    %c0_6 = arith.constant 0 : index
    %c0_7 = arith.constant 0 : index
    %9 = vector.load %arg4[%c0_6, %c0_7] : memref<128x128xbf16, #tpu.memory_space<vmem>>, vector<128x128xbf16>
    %cst_8 = arith.constant dense<0.000000e+00> : vector<256x128xf32>
    %10 = tpu.matmul %8, %9, %cst_8 {dimension_numbers = #tpu.dot_dimension_numbers<[1], [0], [0], [1], [0, 0, 1, 1], [], []>} : vector<256x128xbf16>, vector<128x128xbf16>, vector<256x128xf32> -> vector<256x128xf32>
    %c0_9 = arith.constant 0 : index
    %c0_10 = arith.constant 0 : index
    %11 = vector.load %arg5[%c0_9, %c0_10] : memref<1x128xf32, #tpu.memory_space<vmem>>, vector<1x128xf32>
    %12 = vector.broadcast %11 : vector<1x128xf32> to vector<256x128xf32>
    %13 = arith.addf %10, %12 : vector<256x128xf32>
    %cst_11 = arith.constant 0.000000e+00 : f32
    %14 = vector.broadcast %cst_11 : f32 to vector<256x128xf32>
    %15 = arith.maximumf %13, %14 : vector<256x128xf32>
    %c0_12 = arith.constant 0 : index
    %c0_13 = arith.constant 0 : index
    %16 = vector.load %arg6[%c0_12, %c0_13] : memref<1x128xbf16, #tpu.memory_space<vmem>>, vector<1x128xbf16>
    %17 = arith.truncf %15 : vector<256x128xf32> to vector<256x128xbf16>
    %cst_14 = arith.constant dense<0.000000e+00> : vector<1x256xf32>
    %18 = tpu.matmul %16, %17, %cst_14 {dimension_numbers = #tpu.dot_dimension_numbers<[1], [1], [0], [0], [0, 0, 1, 0], [], []>} : vector<1x128xbf16>, vector<256x128xbf16>, vector<1x256xf32> -> vector<1x256xf32>
    %c0_15 = arith.constant 0 : index
    %19 = memref.load %arg7[%c0_15] : memref<1xf32, #tpu.memory_space<smem>>
    %20 = vector.broadcast %19 : f32 to vector<1x256xf32>
    %21 = arith.addf %18, %20 : vector<1x256xf32>
    %c0_16 = arith.constant 0 : index
    %c0_17 = arith.constant 0 : index
    %22 = vector.load %arg8[%c0_16, %c0_17] : memref<1x256xf32, #tpu.memory_space<vmem>>, vector<1x256xf32>
    tpu.vector_store %arg8[%c0_16, %c0_17], %21 {strides = array<i32>} : memref<1x256xf32, #tpu.memory_space<vmem>>, vector<1x256xf32>,
    return
  }
  func.func @transform_0(%arg0: i32) -> (i32, i32) {
    %c0_i32 = arith.constant 0 : i32
    %c0_i32_0 = arith.constant 0 : i32
    return %arg0, %c0_i32 : i32, i32
  }
  func.func @transform_1(%arg0: i32) -> (i32, i32) {
    %c0_i32 = arith.constant 0 : i32
    %c0_i32_0 = arith.constant 0 : i32
    %c0_i32_1 = arith.constant 0 : i32
    return %c0_i32, %c0_i32_0 : i32, i32
  }
  func.func @transform_2(%arg0: i32) -> (i32, i32) {
    %c0_i32 = arith.constant 0 : i32
    %c0_i32_0 = arith.constant 0 : i32
    %c0_i32_1 = arith.constant 0 : i32
    return %c0_i32, %c0_i32_0 : i32, i32
  }
  func.func @transform_3(%arg0: i32) -> (i32, i32) {
    %c0_i32 = arith.constant 0 : i32
    %c0_i32_0 = arith.constant 0 : i32
    %c0_i32_1 = arith.constant 0 : i32
    return %c0_i32, %c0_i32_0 : i32, i32
  }
  func.func @transform_4(%arg0: i32) -> (i32, i32) {
    %c0_i32 = arith.constant 0 : i32
    %c0_i32_0 = arith.constant 0 : i32
    %c0_i32_1 = arith.constant 0 : i32
    return %c0_i32, %c0_i32_0 : i32, i32
  }
  func.func @transform_5(%arg0: i32) -> (i32, i32) {
    %c0_i32 = arith.constant 0 : i32
    %c0_i32_0 = arith.constant 0 : i32
    %c0_i32_1 = arith.constant 0 : i32
    return %c0_i32, %c0_i32_0 : i32, i32
  }
  func.func @transform_6(%arg0: i32) -> i32 {
    %c0_i32 = arith.constant 0 : i32
    %c0_i32_0 = arith.constant 0 : i32
    return %c0_i32 : i32
  }
  func.func @transform_7(%arg0: i32) -> (i32, i32) {
    %c0_i32 = arith.constant 0 : i32
    %c0_i32_0 = arith.constant 0 : i32
    return %c0_i32, %arg0 : i32, i32
  }
}

</mosaic_0001>

<bundles_post_ra>
// kernel: tpu_custom_call.1
= control target key start
LH: loop header
LB: loop body
LE: loop exit
PB: predicated region body
PF: predicated region fallthrough
CT: control target
= control target key end

     0   :  { %vm156_vm0 = vcmask 130048   ;;  %s1258_s0 = inlined_call_operand.vmem [shape: bf16[256,16], index: 0, kind: input, shape index: {}]   ;;  %s1259_s1 = inlined_call_operand.vmem [shape: bf16[16,128], index: 1, kind: input, shape index: {}]   ;;  %s1260_s2 = inlined_call_operand.vmem [shape: f32[1,128], index: 2, kind: input, shape index: {}]   ;;  %s1261_s3 = inlined_call_operand.vmem [shape: bf16[128,128], index: 3, kind: input, shape index: {}]   ;;  %s1262_s4 = inlined_call_operand.vmem [shape: f32[1,128], index: 4, kind: input, shape index: {}]   ;;  %s1263_s5 = inlined_call_operand.vmem [shape: bf16[1,128], index: 5, kind: input, shape index: {}]   ;;  %s1264_s6 = inlined_call_operand.<no memory space> [shape: f32[1], index: 6, kind: input, shape index: {}]   ;;  %s1265_s7 = inlined_call_operand.hbm [shape: f32[1,256], index: 7, kind: output, shape index: {}]  }
   0x1   :  { %v961_v0 = vld [vmem:[%s1259_s1] sm:$0xff]   ;;  %v963_v2 = vld [vmem:[%s1258_s0 + $0x8] sm:$0xff]   ;;  %v964_v3 = vld [vmem:[%s1258_s0 + $0x10] sm:$0xff]  }
   0x2   :  { %v962_v1 = vld [vmem:[%s1258_s0] sm:$0xff]   ;;  %877 = vmatprep.subr.bf16.mxu0 %v961_v0  ;;  %v965_v4 = vld [vmem:[%s1258_s0 + $0x18] sm:$0xff]   ;;  %v967_v6 = vld [vmem:[%s1258_s0 + $0x28] sm:$0xff]  }
   0x3   :  { %878 = vmatpush3.bf16.msra.mxu0 %v961_v0  ;;  %879 = vmatprep.mubr.msk.bf16.mxu0 %vm156_vm0, %v962_v1  ;;  %v966_v5 = vld [vmem:[%s1258_s0 + $0x20] sm:$0xff]   ;;  %v978_v7 = vld [vmem:[%s1261_s3 + $0x38] sm:$0xff]   ;;  %v979_v8 = vld [vmem:[%s1261_s3 + $0x30] sm:$0xff]  }
   0x4   :  { %v968_v9 = vld [vmem:[%s1258_s0 + $0x30] sm:$0xff]   ;;  %911 = vmatprep.subr.bf16.mxu1 %v978_v7  ;;  %v980_v10 = vld [vmem:[%s1261_s3 + $0x28] sm:$0xff]  }
   0x5   :  { %912 = vmatpush3.bf16.msra.mxu1 %v978_v7 }
   0x6   :  { %880 = vmatmul.mubr.msk.bf16.vlgmr.msra.gmra.mxu0 %vm156_vm0, %v963_v2  ;;  %913 = vmatprep.subr.bf16.mxu1 %v979_v8 }
   0x7   :  { %883 = vmatprep.mubr.msk.bf16.mxu0 %vm156_vm0, %v964_v3 }
   0x9   :  { %914 = vmatpush3.bf16.msra.mxu1 %v979_v8 }
   0xe   :  { %884 = vmatmul.mubr.msk.bf16.gmra.mxu0 %vm156_vm0, %v965_v4 }
   0xf   :  { %887 = vmatprep.mubr.msk.bf16.mxu0 %vm156_vm0, %v966_v5 }
  0x16   :  { %888 = vmatmul.mubr.msk.bf16.gmra.mxu0 %vm156_vm0, %v967_v6 }
  0x17   :  { %891 = vmatprep.mubr.msk.bf16.mxu0 %vm156_vm0, %v968_v9 }
  0x18   :  { %13 = vsyncpa [#allocation4], 0  ;;  %915 = vmatprep.subr.bf16.mxu1 %v980_v10  ;;  %v981_v11 = vld [vmem:[%s1261_s3 + $0x20] sm:$0xff]   ;;  %v969_v12 = vld [vmem:[%s1258_s0 + $0x38] sm:$0xff]   ;;  %s1009_s29 = smov [#allocation3]  }
  0x19   :  { %v970_v13 = vld [vmem:[%s1258_s0 + $0x40] sm:$0xff]   ;;  %916 = vmatpush3.bf16.msra.mxu1 %v980_v10  ;;  %v982_v14 = vld [vmem:[%s1261_s3 + $0x18] sm:$0xff]   ;;  %v971_v15 = vld [vmem:[%s1258_s0 + $0x48] sm:$0xff]   ;;  %s767_s30 = sshll.u32 %s1009_s29, 4  ;;  %s768_s30 = int_to_ptr.vmem [resolvable:$true] %s767_s30 }
  0x1a   :  { %917 = vmatprep.subr.bf16.mxu1 %v981_v11  ;;  %v972_v16 = vld [vmem:[%s1258_s0 + $0x50] sm:$0xff]   ;;  %v973_v17 = vld [vmem:[%s1258_s0 + $0x58] sm:$0xff]   ;;  %v974_v18 = vld [vmem:[%s1258_s0 + $0x60] sm:$0xff]   ;;  %s986_s8 = scalar_lea.vmem %s768_s30, 32  ;;  %p991_p1 = scmp.lt.s32.totalorder %s768_s30, %s768_s30 }
  0x1b   :  { %v975_v19 = vld [vmem:[%s1258_s0 + $0x68] sm:$0xff]   ;;  %v976_v20 = vld [vmem:[%s1258_s0 + $0x70] sm:$0xff]   ;;  %v977_v21 = vld [vmem:[%s1258_s0 + $0x78] sm:$0xff]   ;;  %p987_p0 = scmp.ne.s32.totalorder %s768_s30, %s986_s8  ;;  %p992_p2 = scmp.lt.s32.totalorder %s986_s8, %s986_s8 }
  0x1c   :  { %v983_v22 = vld [vmem:[%s1261_s3 + $0x10] sm:$0xff]   ;;  %v984_v23 = vld [vmem:[%s1261_s3 + $0x8] sm:$0xff]   ;;  %v985_v24 = vld [vmem:[%s1261_s3] sm:$0xff]  }
  0x1d   :  { %918 = vmatpush3.bf16.msra.mxu1 %v981_v11  ;;  %v1144_v27 = vld [vmem:[%s1260_s2] ss:$0 sm:$0xff]  ;;  %p993_p3 = por %p992_p2, %p991_p1 }
  0x1e   :  { %892 = vmatmul.mubr.msk.bf16.gmra.mxu0 %vm156_vm0, %v969_v12  ;;  %919 = vmatprep.subr.bf16.mxu1 %v982_v14 }
  0x1f   :  { %895 = vmatprep.mubr.msk.bf16.mxu0 %vm156_vm0, %v970_v13  ;;  %p994_p4 = pnand %p993_p3, %p987_p0 }
  0x21   :  { %920 = vmatpush3.bf16.msra.mxu1 %v982_v14 }
  0x22   :  { %921 = vmatprep.subr.bf16.mxu1 %v983_v22 }
  0x25   :  { %922 = vmatpush3.bf16.msra.mxu1 %v983_v22 }
  0x26   :  { %896 = vmatmul.mubr.msk.bf16.gmra.mxu0 %vm156_vm0, %v971_v15  ;;  %923 = vmatprep.subr.bf16.mxu1 %v984_v23 }
  0x27   :  { %899 = vmatprep.mubr.msk.bf16.mxu0 %vm156_vm0, %v972_v16 }
  0x29   :  { %924 = vmatpush3.bf16.msra.mxu1 %v984_v23 }
  0x2a   :  { %925 = vmatprep.subr.bf16.mxu1 %v985_v24 }
  0x2d   :  { %926 = vmatpush3.bf16.msra.mxu1 %v985_v24 }
  0x2e   :  { %900 = vmatmul.mubr.msk.bf16.gmra.mxu0 %vm156_vm0, %v973_v17 }
  0x2f   :  { %903 = vmatprep.mubr.msk.bf16.mxu0 %vm156_vm0, %v974_v18 }
  0x36   :  { %904 = vmatmul.mubr.msk.bf16.gmra.mxu0 %vm156_vm0, %v975_v19 }
  0x37   :  { %907 = vmatprep.mubr.msk.bf16.mxu0 %vm156_vm0, %v976_v20 }
  0x3e   :  { %908 = vmatmul.mubr.msk.bf16.gmra.mxu0 %vm156_vm0, %v977_v21 }
  0xc6   :  { %v881_v25 = vpop.f32.mrf.mxu0 }
  0xc7   :  { %v248_v31 = vadd.f32 %v881_v25, %v1144_v27 }
  0xc8   :  { %v239_v26 = vpop.f32.mrf.mxu0 }
  0xc9   :  { %v240_v29 = vadd.f32 %v1144_v27, %v239_v26  ;;  %v368_v38 = vmax.f32 %v248_v31, 0.0 }
  0xca   :  { %v882_v28 = vpop.f32.mrf.mxu0 }
  0xcb   :  { %v251_v30 = vadd.f32 %v882_v28, %v1144_v27  ;;  %v366_v36 = vmax.f32 %v240_v29, 0.0 }
  0xcc   :  { %v242_v32 = vpop.f32.mrf.mxu0 }
  0xcd   :  { %v243_v33 = vadd.f32 %v1144_v27, %v242_v32  ;;  %v369_v34 = vmax.f32 %v251_v30, 0.0 }
  0xce   :  { %v885_v35 = vpop.f32.mrf.mxu0 }
  0xcf   :  { %v367_v37 = vmax.f32 %v243_v33, 0.0  ;;  %v399_v41 = vpack.c.bf16 %v369_v34, %v368_v38  ;;  %v264_v45 = vadd.f32 %v885_v35, %v1144_v27 }
  0xd0   :  { %v255_v39 = vpop.f32.mrf.mxu0 }
  0xd1   :  { %v398_v40 = vpack.c.bf16 %v367_v37, %v366_v36  ;;  %v256_v43 = vadd.f32 %v1144_v27, %v255_v39  ;;  %v372_v52 = vmax.f32 %v264_v45, 0.0 }
  0xd2   :  { %v886_v42 = vpop.f32.mrf.mxu0 }
  0xd3   :  { %v267_v44 = vadd.f32 %v886_v42, %v1144_v27  ;;  %927 = vmatprep.mubr.bf16.mxu1 %v398_v40  ;;  %v370_v50 = vmax.f32 %v256_v43, 0.0 }
  0xd4   :  { %v258_v46 = vpop.f32.mrf.mxu0  ;;  %928 = vmatmul.mubr.bf16.vlgmr.msra.gmra.mxu1 %v399_v41 }
  0xd5   :  { %v259_v47 = vadd.f32 %v1144_v27, %v258_v46  ;;  %v373_v48 = vmax.f32 %v267_v44, 0.0 }
  0xd6   :  { %v889_v49 = vpop.f32.mrf.mxu0 }
  0xd7   :  { %v371_v51 = vmax.f32 %v259_v47, 0.0  ;;  %v401_v55 = vpack.c.bf16 %v373_v48, %v372_v52  ;;  %v280_v59 = vadd.f32 %v889_v49, %v1144_v27 }
  0xd8   :  { %v271_v53 = vpop.f32.mrf.mxu0 }
  0xd9   :  { %v400_v54 = vpack.c.bf16 %v371_v51, %v370_v50  ;;  %v272_v57 = vadd.f32 %v1144_v27, %v271_v53  ;;  %v376_v2 = vmax.f32 %v280_v59, 0.0 }
  0xda   :  { %v890_v56 = vpop.f32.mrf.mxu0 }
  0xdb   :  { %v283_v58 = vadd.f32 %v890_v56, %v1144_v27  ;;  %931 = vmatprep.mubr.bf16.mxu1 %v400_v54  ;;  %v374_v0 = vmax.f32 %v272_v57, 0.0 }
  0xdc   :  { %v274_v60 = vpop.f32.mrf.mxu0  ;;  %932 = vmatmul.mubr.bf16.gmra.mxu1 %v401_v55 }
  0xdd   :  { %v275_v61 = vadd.f32 %v1144_v27, %v274_v60  ;;  %v377_v62 = vmax.f32 %v283_v58, 0.0 }
  0xde   :  { %v893_v63 = vpop.f32.mrf.mxu0 }
  0xdf   :  { %v375_v1 = vmax.f32 %v275_v61, 0.0  ;;  %v403_v5 = vpack.c.bf16 %v377_v62, %v376_v2  ;;  %v296_v9 = vadd.f32 %v893_v63, %v1144_v27 }
  0xe0   :  { %v287_v3 = vpop.f32.mrf.mxu0 }
  0xe1   :  { %v402_v4 = vpack.c.bf16 %v375_v1, %v374_v0  ;;  %v288_v7 = vadd.f32 %v1144_v27, %v287_v3  ;;  %v380_v16 = vmax.f32 %v296_v9, 0.0 }
  0xe2   :  { %v894_v6 = vpop.f32.mrf.mxu0 }
  0xe3   :  { %v299_v8 = vadd.f32 %v894_v6, %v1144_v27  ;;  %935 = vmatprep.mubr.bf16.mxu1 %v402_v4  ;;  %v378_v14 = vmax.f32 %v288_v7, 0.0 }
  0xe4   :  { %v290_v10 = vpop.f32.mrf.mxu0  ;;  %936 = vmatmul.mubr.bf16.gmra.mxu1 %v403_v5 }
  0xe5   :  { %v291_v11 = vadd.f32 %v1144_v27, %v290_v10  ;;  %v381_v12 = vmax.f32 %v299_v8, 0.0 }
  0xe6   :  { %v897_v13 = vpop.f32.mrf.mxu0 }
  0xe7   :  { %v379_v15 = vmax.f32 %v291_v11, 0.0  ;;  %v405_v19 = vpack.c.bf16 %v381_v12, %v380_v16  ;;  %v312_v23 = vadd.f32 %v897_v13, %v1144_v27  ;;  %v1181_v11 = vld [vmem:[%s1263_s5] sm:$0x1] }
  0xe8   :  { %v303_v17 = vpop.f32.mrf.mxu0  ;;  %875 = vmatprep.mubr.bf16.mxu0 %v1181_v11 }
  0xe9   :  { %v404_v18 = vpack.c.bf16 %v379_v15, %v378_v14  ;;  %v304_v21 = vadd.f32 %v1144_v27, %v303_v17  ;;  %v384_v31 = vmax.f32 %v312_v23, 0.0 }
  0xea   :  { %v898_v20 = vpop.f32.mrf.mxu0 }
  0xeb   :  { %v315_v22 = vadd.f32 %v898_v20, %v1144_v27  ;;  %939 = vmatprep.mubr.bf16.mxu1 %v404_v18  ;;  %v382_v29 = vmax.f32 %v304_v21, 0.0 }
  0xec   :  { %v306_v24 = vpop.f32.mrf.mxu0  ;;  %940 = vmatmul.mubr.bf16.gmra.mxu1 %v405_v19 }
  0xed   :  { %v307_v25 = vadd.f32 %v1144_v27, %v306_v24  ;;  %v385_v26 = vmax.f32 %v315_v22, 0.0 }
  0xee   :  { %v901_v28 = vpop.f32.mrf.mxu0 }
  0xef   :  { %v383_v30 = vmax.f32 %v307_v25, 0.0  ;;  %v407_v34 = vpack.c.bf16 %v385_v26, %v384_v31  ;;  %v328_v38 = vadd.f32 %v901_v28, %v1144_v27 }
  0xf0   :  { %v319_v32 = vpop.f32.mrf.mxu0 }
  0xf1   :  { %v406_v33 = vpack.c.bf16 %v383_v30, %v382_v29  ;;  %v320_v36 = vadd.f32 %v1144_v27, %v319_v32  ;;  %v388_v45 = vmax.f32 %v328_v38, 0.0 }
  0xf2   :  { %v902_v35 = vpop.f32.mrf.mxu0 }
  0xf3   :  { %v331_v37 = vadd.f32 %v902_v35, %v1144_v27  ;;  %943 = vmatprep.mubr.bf16.mxu1 %v406_v33  ;;  %v386_v43 = vmax.f32 %v320_v36, 0.0 }
  0xf4   :  { %v322_v39 = vpop.f32.mrf.mxu0  ;;  %944 = vmatmul.mubr.bf16.gmra.mxu1 %v407_v34 }
  0xf5   :  { %v323_v40 = vadd.f32 %v1144_v27, %v322_v39  ;;  %v389_v41 = vmax.f32 %v331_v37, 0.0 }
  0xf6   :  { %v905_v42 = vpop.f32.mrf.mxu0 }
  0xf7   :  { %v387_v44 = vmax.f32 %v323_v40, 0.0  ;;  %v409_v48 = vpack.c.bf16 %v389_v41, %v388_v45  ;;  %v344_v52 = vadd.f32 %v905_v42, %v1144_v27 }
  0xf8   :  { %v335_v46 = vpop.f32.mrf.mxu0 }
  0xf9   :  { %v408_v47 = vpack.c.bf16 %v387_v44, %v386_v43  ;;  %v336_v50 = vadd.f32 %v1144_v27, %v335_v46  ;;  %v392_v59 = vmax.f32 %v344_v52, 0.0 }
  0xfa   :  { %v906_v49 = vpop.f32.mrf.mxu0 }
  0xfb   :  { %v347_v51 = vadd.f32 %v906_v49, %v1144_v27  ;;  %947 = vmatprep.mubr.bf16.mxu1 %v408_v47  ;;  %v390_v57 = vmax.f32 %v336_v50, 0.0 }
  0xfc   :  { %v338_v53 = vpop.f32.mrf.mxu0  ;;  %948 = vmatmul.mubr.bf16.gmra.mxu1 %v409_v48 }
  0xfd   :  { %v339_v54 = vadd.f32 %v1144_v27, %v338_v53  ;;  %v393_v55 = vmax.f32 %v347_v51, 0.0 }
  0xfe   :  { %v909_v56 = vpop.f32.mrf.mxu0 }
  0xff   :  { %v391_v58 = vmax.f32 %v339_v54, 0.0  ;;  %v411_v62 = vpack.c.bf16 %v393_v55, %v392_v59  ;;  %v360_v2 = vadd.f32 %v909_v56, %v1144_v27 }
 0x100   :  { %v351_v60 = vpop.f32.mrf.mxu0 }
 0x101   :  { %v410_v61 = vpack.c.bf16 %v391_v58, %v390_v57  ;;  %v352_v0 = vadd.f32 %v1144_v27, %v351_v60  ;;  %v396_v8 = vmax.f32 %v360_v2, 0.0 }
 0x102   :  { %v910_v63 = vpop.f32.mrf.mxu0 }
 0x103   :  { %v363_v1 = vadd.f32 %v910_v63, %v1144_v27  ;;  %951 = vmatprep.mubr.bf16.mxu1 %v410_v61  ;;  %v394_v6 = vmax.f32 %v352_v0, 0.0 }
 0x104   :  { %v354_v3 = vpop.f32.mrf.mxu0  ;;  %952 = vmatmul.mubr.bf16.gmra.mxu1 %v411_v62 }
 0x105   :  { %v355_v4 = vadd.f32 %v1144_v27, %v354_v3  ;;  %v397_v5 = vmax.f32 %v363_v1, 0.0  ;;  %v1187_v27 = vld [vmem:[%s1262_s4] ss:$0 sm:$0xff] }
 0x107   :  { %v395_v7 = vmax.f32 %v355_v4, 0.0  ;;  %v413_v10 = vpack.c.bf16 %v397_v5, %v396_v8 }
 0x109   :  { %v412_v9 = vpack.c.bf16 %v395_v7, %v394_v6 }
 0x10b   :  { %955 = vmatprep.mubr.bf16.mxu1 %v412_v9 }
 0x10c   :  { %956 = vmatmul.mubr.bf16.gmra.mxu1 %v413_v10 }
 0x194   :  { %v929_v12 = vpop.f32.mrf.mxu1 }
 0x195   :  { %v528_v14 = vadd.f32 %v929_v12, %v1187_v27 }
 0x196   :  { %v519_v13 = vpop.f32.mrf.mxu1 }
 0x197   :  { %v520_v16 = vadd.f32 %v1187_v27, %v519_v13  ;;  %v648_v19 = vmax.f32 %v528_v14, 0.0 }
 0x198   :  { %v930_v15 = vpop.f32.mrf.mxu1 }
 0x199   :  { %v531_v17 = vadd.f32 %v930_v15, %v1187_v27  ;;  %v646_v23 = vmax.f32 %v520_v16, 0.0 }
 0x19a   :  { %v522_v18 = vpop.f32.mrf.mxu1 }
 0x19b   :  { %v649_v20 = vmax.f32 %v531_v17, 0.0  ;;  %v523_v21 = vadd.f32 %v1187_v27, %v522_v18 }
 0x19c   :  { %v933_v22 = vpop.f32.mrf.mxu1 }
 0x19d   :  { %v1193_v24 = vpack.c.bf16 %v649_v20, %v648_v19  ;;  %v647_v25 = vmax.f32 %v523_v21, 0.0  ;;  %v544_v29 = vadd.f32 %v933_v22, %v1187_v27 }
 0x19e   :  { %v535_v26 = vpop.f32.mrf.mxu1 }
 0x19f   :  { %v1195_v28 = vpack.c.bf16 %v647_v25, %v646_v23  ;;  %v536_v31 = vadd.f32 %v1187_v27, %v535_v26  ;;  %v652_v34 = vmax.f32 %v544_v29, 0.0 }
 0x1a0   :  { %v934_v30 = vpop.f32.mrf.mxu1 }
 0x1a1   :  { %v547_v32 = vadd.f32 %v934_v30, %v1187_v27  ;;  %v650_v38 = vmax.f32 %v536_v31, 0.0 }
 0x1a2   :  { %v538_v33 = vpop.f32.mrf.mxu1 }
 0x1a3   :  { %v653_v35 = vmax.f32 %v547_v32, 0.0  ;;  %v539_v36 = vadd.f32 %v1187_v27, %v538_v33 }
 0x1a4   :  { %v1201_v37 = vpop.f32.mrf.mxu1 }
 0x1a5   :  { %v1203_v39 = vpack.c.bf16 %v653_v35, %v652_v34  ;;  %v651_v40 = vmax.f32 %v539_v36, 0.0 }
 0x1a6   :  { %v1205_v41 = vpop.f32.mrf.mxu1 }
 0x1a7   :  { %v1207_v42 = vpack.c.bf16 %v651_v40, %v650_v38 }
 0x1a8   :  { %v938_v43 = vpop.f32.mrf.mxu1 }
 0x1a9   :  { %v563_v40 = vadd.f32 %v938_v43, %v1187_v27 }
 0x1aa   :  { %v1209_v44 = vpop.f32.mrf.mxu1 }
 0x1ac   :  { %v941_v45 = vpop.f32.mrf.mxu1 }
 0x1ad   :  { %v576_v12 = vadd.f32 %v941_v45, %v1187_v27 }
 0x1ae   :  { %v567_v46 = vpop.f32.mrf.mxu1 }
 0x1af   :  { %v660_v21 = vmax.f32 %v576_v12, 0.0  ;;  %v568_v32 = vadd.f32 %v1187_v27, %v567_v46 }
 0x1b0   :  { %v942_v47 = vpop.f32.mrf.mxu1 }
 0x1b1   :  { %v579_v8 = vadd.f32 %v942_v47, %v1187_v27  ;;  %v658_v36 = vmax.f32 %v568_v32, 0.0 }
 0x1b2   :  { %v570_v48 = vpop.f32.mrf.mxu1 }
 0x1b3   :  { %v661_v16 = vmax.f32 %v579_v8, 0.0  ;;  %v571_v29 = vadd.f32 %v1187_v27, %v570_v48 }
 0x1b4   :  { %v945_v49 = vpop.f32.mrf.mxu1 }
 0x1b5   :  { %v592_v51 = vadd.f32 %v945_v49, %v1187_v27  ;;  %v686_v26 = vpack.c.bf16 %v661_v16, %v660_v21  ;;  %v659_v34 = vmax.f32 %v571_v29, 0.0  ;;  %v560_v49 = vadd.f32 %v1201_v37, %v1187_v27 }
 0x1b6   :  { %v583_v50 = vpop.f32.mrf.mxu1 }
 0x1b7   :  { %v584_v53 = vadd.f32 %v1187_v27, %v583_v50  ;;  %v664_v56 = vmax.f32 %v592_v51, 0.0  ;;  %v685_v45 = vpack.c.bf16 %v659_v34, %v658_v36  ;;  %v657_v50 = vmax.f32 %v563_v40, 0.0 }
 0x1b8   :  { %v946_v52 = vpop.f32.mrf.mxu1 }
 0x1b9   :  { %v595_v54 = vadd.f32 %v946_v52, %v1187_v27  ;;  %v662_v60 = vmax.f32 %v584_v53, 0.0  ;;  %v656_v52 = vmax.f32 %v560_v49, 0.0 }
 0x1ba   :  { %v586_v55 = vpop.f32.mrf.mxu1 }
 0x1bb   :  { %v665_v57 = vmax.f32 %v595_v54, 0.0  ;;  %v587_v58 = vadd.f32 %v1187_v27, %v586_v55  ;;  %v684_v54 = vpack.c.bf16 %v657_v50, %v656_v52  ;;  %v555_v55 = vadd.f32 %v1187_v27, %v1209_v44 }
 0x1bc   :  { %v949_v59 = vpop.f32.mrf.mxu1 }
 0x1bd   :  { %v1215_v61 = vpack.c.bf16 %v665_v57, %v664_v56  ;;  %v663_v62 = vmax.f32 %v587_v58, 0.0  ;;  %v552_v57 = vadd.f32 %v1187_v27, %v1205_v41  ;;  %v608_v37 = vadd.f32 %v949_v59, %v1187_v27 }
 0x1be   :  { %v1217_v63 = vpop.f32.mrf.mxu1  ;;  %v655_v58 = vmax.f32 %v555_v55, 0.0 }
 0x1bf   :  { %v1219_v0 = vpack.c.bf16 %v663_v62, %v662_v60  ;;  %v654_v62 = vmax.f32 %v552_v57, 0.0  ;;  %v600_v44 = vadd.f32 %v1187_v27, %v1217_v63  ;;  %v744_v63 = vlaneseq }
 0x1c0   :  { %v950_v1 = vpop.f32.mrf.mxu1 }
 0x1c1   :  { %v611_v43 = vadd.f32 %v950_v1, %v1187_v27  ;;  %v745_v8 = vshrl.u32 %v744_v63, 7  ;;  %vm758_vm1 = vcmp.lt.s32.totalorder %v744_v63, 256 }
 0x1c2   :  { %v602_v2 = vpop.f32.mrf.mxu1 }
 0x1c3   :  { %v669_v60 = vmax.f32 %v611_v43, 0.0 }
 0x1c4   :  { %v953_v3 = vpop.f32.mrf.mxu1 }
 0x1c5   :  { %v624_v33 = vadd.f32 %v953_v3, %v1187_v27  ;;  %v668_v3 = vmax.f32 %v608_v37, 0.0 }
 0x1c6   :  { %v615_v4 = vpop.f32.mrf.mxu1 }
 0x1c7   :  { %v672_v38 = vmax.f32 %v624_v33, 0.0  ;;  %v616_v46 = vadd.f32 %v1187_v27, %v615_v4  ;;  %v683_v4 = vpack.c.bf16 %v655_v58, %v654_v62 }
 0x1c8   :  { %v954_v5 = vpop.f32.mrf.mxu1 }
 0x1c9   :  { %v627_v30 = vadd.f32 %v954_v5, %v1187_v27  ;;  %v670_v53 = vmax.f32 %v616_v46, 0.0  ;;  %v690_v5 = vpack.c.bf16 %v669_v60, %v668_v3 }
 0x1ca   :  { %v618_v6 = vpop.f32.mrf.mxu1 }
 0x1cb   :  { %v673_v35 = vmax.f32 %v627_v30, 0.0  ;;  %v619_v48 = vadd.f32 %v1187_v27, %v618_v6  ;;  %v603_v6 = vadd.f32 %v1187_v27, %v602_v2 }
 0x1cc   :  { %v957_v7 = vpop.f32.mrf.mxu1 }
 0x1cd   :  { %v640_v10 = vadd.f32 %v957_v7, %v1187_v27  ;;  %v692_v47 = vpack.c.bf16 %v673_v35, %v672_v38  ;;  %v671_v51 = vmax.f32 %v619_v48, 0.0  ;;  %v667_v1 = vmax.f32 %v603_v6, 0.0 }
 0x1ce   :  { %v631_v9 = vpop.f32.mrf.mxu1  ;;  %v666_v7 = vmax.f32 %v600_v44, 0.0 }
 0x1cf   :  { %v632_v14 = vadd.f32 %v1187_v27, %v631_v9  ;;  %v676_v18 = vmax.f32 %v640_v10, 0.0  ;;  %v691_v56 = vpack.c.bf16 %v671_v51, %v670_v53 }
 0x1d0   :  { %v958_v13 = vpop.f32.mrf.mxu1  ;;  %v689_v41 = vpack.c.bf16 %v667_v1, %v666_v7 }
 0x1d1   :  { %v643_v15 = vadd.f32 %v958_v13, %v1187_v27  ;;  %v674_v22 = vmax.f32 %v632_v14, 0.0 }
 0x1d2   :  { %v634_v17 = vpop.f32.mrf.mxu1 }
 0x1d3   :  { %v677_v19 = vmax.f32 %v643_v15, 0.0  ;;  %v635_v20 = vadd.f32 %v1187_v27, %v634_v17  ;;  %v1008_v27 = vmov 1966171168  }
 0x1d4   :  { %v742_v59 = vunpack.c.l.s4 %v1008_v27 }
 0x1d5   :  { %v694_v23 = vpack.c.bf16 %v677_v19, %v676_v18  ;;  %v675_v25 = vmax.f32 %v635_v20, 0.0 }
 0x1d6   :  { %v743_v2 = vunpack.c.0.s8 %v742_v59 }
 0x1d7   :  { %v693_v31 = vpack.c.bf16 %v675_v25, %v674_v22  ;;  %859 = vmatprep.subr.bf16.mxu0 %v694_v23 }
 0x1d8   :  { %860 = vmatpush3.bf16.xpose.msra.mxu0 %v686_v26 }
 0x1d9   :  { %861 = vmatprep.subr.bf16.mxu0 %v693_v31 }
 0x1e0   :  { %862 = vmatpush3.bf16.xpose.msra.mxu0 %v685_v45 }
 0x1e1   :  { %863 = vmatprep.subr.bf16.mxu0 %v692_v47 }
 0x1e8   :  { %864 = vmatpush3.bf16.xpose.msra.mxu0 %v684_v54 }
 0x1e9   :  { %865 = vmatprep.subr.bf16.mxu0 %v691_v56 }
 0x1f0   :  { %866 = vmatpush3.bf16.xpose.msra.mxu0 %v683_v4 }
 0x1f1   :  { %867 = vmatprep.subr.bf16.mxu0 %v690_v5 }
 0x1f8   :  { %868 = vmatpush3.bf16.xpose.msra.mxu0 %v1203_v39  ;;  %v696_v39 = vstv %s1264_s6 }
 0x1f9   :  { %869 = vmatprep.subr.bf16.mxu0 %v689_v41 }
 0x200   :  { %870 = vmatpush3.bf16.xpose.msra.mxu0 %v1207_v42 }
 0x201   :  { %871 = vmatprep.subr.bf16.mxu0 %v1215_v61 }
 0x208   :  { %872 = vmatpush3.bf16.xpose.msra.mxu0 %v1193_v24  ;;  %v746_v24 = vsub.s32 %v743_v2, %v745_v8 }
 0x209   :  { %873 = vmatprep.subr.bf16.mxu0 %v1219_v0 }
 0x210   :  { %874 = vmatpush3.bf16.xpose.msra.mxu0 %v1195_v28 }
 0x217   :  { %876 = vmatmul.mubr.bf16.vlgmr.msra.gmra.mxu0 %v1181_v11 }
 0x2d7   :  { %v731_v42 = vpop.f32.mrf.mxu0 }
 0x2d8   :  { %v732_v61 = vadd.f32 %v731_v42, %v696_v39 }
 0x2d9   :  { %v733_v9 = vpop.f32.mrf.mxu0 }
 0x2da   :  { %v734_v10 = vadd.f32 %v733_v9, %v696_v39 }
 0x2db   :  { %v735_v12 = vpop.f32.mrf.mxu0 }
 0x2dc   :  { %v740_v0 = vcombine.low %v732_v61, %v734_v10 }
 0x2dd   :  { %v736_v13 = vpop.f32.mrf.mxu0 }
 0x2de   :  { %v747_v11 = vrot.slane %v740_v0, %v746_v24 }
 0x2e0   :  { %v754_v28 = vrot.slane %v747_v11, %v746_v24 }
 0x2e2   :  { %760 = vst.msk [vmem:[#allocation3] sm:$0x3] %vm758_vm1, %v754_v28 }
 0x2e3   :  { %997 = shalt.err (!%p994_p4)
}
 0x2e4   :  { %770 = dma.vmem_to_hbm [thread:$0]  %s768_s30, 32, %s1265_s7, [#allocation4]  }
 0x2e5   :  { %1006 = dma.done.wait [#allocation4], 32  }
 0x2e6   :  { %1007 = vsyncadd [#allocation4], 4294967264 }
 0x2e7   :  { %774 = vsyncpa [#allocation4], 1 }

</bundles_post_ra>
